<compile_context>
chip_gen: v7x
topology: tpu7x:2x2x1
jax: 0.10.0
libtpu: 0.0.40
codegen_flags: <defaults>
</compile_context>

<pallas_src>
import functools

import jax
import jax.numpy as jnp
from jax.experimental import pallas as pl
from jax.experimental.pallas import tpu as pltpu


def _encoder_kernel(x_ref, w1_ref, b1_ref, w2_ref, b2_ref, w3_ref, b3_ref,
                    o_ref):
    # x arrives as f32; cast to bf16 on the VPU (free under the MXU).
    x = x_ref[...].astype(jnp.bfloat16)
    # Layer 1: (TB, 784) bf16 @ (784, 512) bf16 -> f32 acc, + b1, ReLU.
    h1 = jnp.dot(x, w1_ref[...], preferred_element_type=jnp.float32)
    h1 = jnp.maximum(h1 + b1_ref[...], 0.0).astype(jnp.bfloat16)
    # Layer 2: (TB, 512) @ (512, 256) + b2, ReLU.
    h2 = jnp.dot(h1, w2_ref[...], preferred_element_type=jnp.float32)
    h2 = jnp.maximum(h2 + b2_ref[...], 0.0).astype(jnp.bfloat16)
    # Layer 3: (TB, 256) @ (256, out_pad) + b3 (no activation), lane-dense out.
    h3 = jnp.dot(h2, w3_ref[...], preferred_element_type=jnp.float32)
    o_ref[...] = (h3 + b3_ref[...]).astype(o_ref.dtype)


def _round_up(v, m):
    return ((v + m - 1) // m) * m


def _choose_tb(B):
    # B <= 128: one (latency-bound) tile.
    # 128 < B <= 512: TB=128 so grid >= 2 and both v7x TensorCores get work.
    # Larger B: bigger tiles to amortize per-grid-step overhead, while still
    # keeping grid >= 2 on v7x.
    if B <= 128:
        return _round_up(max(B, 8), 8)
    if B <= 512:
        return 128
    if B <= 2048:
        return 256
    return 512


def prepare_params(params, latent_dim, categorical_dim):
    """One-time (init-time) conversion of f32 (in,out) params to kernel layout.

    Weights -> bf16; W3/b3 zero-padded along the output dim to a lane-dense
    multiple of 128; biases stay f32 (added after f32 accumulation).  Hoisting
    this out of the per-call path removes per-call cast/pad HBM passes.
    """
    w1, b1, w2, b2, w3, b3 = params
    out_dim = latent_dim * categorical_dim
    out_pad = _round_up(max(out_dim, 128), 128)
    w3_p = jnp.pad(w3, ((0, 0), (0, out_pad - out_dim))).astype(jnp.bfloat16)
    b3_p = jnp.pad(b3, ((0, 0), (0, out_pad - out_dim)))
    return (w1.astype(jnp.bfloat16), b1,
            w2.astype(jnp.bfloat16), b2,
            w3_p, b3_p)


@functools.partial(jax.jit, static_argnames=("latent_dim", "categorical_dim"))
def encoder_forward(x, kparams, latent_dim, categorical_dim):
    """x: (B, 784) float32.  kparams: output of prepare_params.

    Returns (B, latent_dim, categorical_dim) float32.
    """
    w1, b1, w2, b2, w3, b3 = kparams
    B, in_dim = x.shape
    h1_dim = w1.shape[1]
    h2_dim = w2.shape[1]
    out_dim = latent_dim * categorical_dim
    out_pad = w3.shape[1]

    TB = _choose_tb(B)
    grid = (pl.cdiv(B, TB),)
    b_eff = grid[0] * TB  # includes the (discarded) ragged-tile rows

    flops = 2 * b_eff * (in_dim * h1_dim + h1_dim * h2_dim + h2_dim * out_pad)
    bytes_accessed = (
        B * in_dim * 4                                  # x (f32, read once)
        + (w1.size + w2.size + w3.size) * 2             # resident bf16 weights
        + (b1.size + b2.size + b3.size) * 4             # f32 biases
        + B * out_pad * 4)                              # output slab

    out = pl.pallas_call(
        _encoder_kernel,
        out_shape=jax.ShapeDtypeStruct((B, out_pad), jnp.float32),
        grid_spec=pltpu.PrefetchScalarGridSpec(
            num_scalar_prefetch=0,
            grid=grid,
            in_specs=[
                pl.BlockSpec((TB, in_dim), lambda i: (i, 0)),       # x tile (f32)
                pl.BlockSpec((in_dim, h1_dim), lambda i: (0, 0)),   # W1 (resident)
                pl.BlockSpec((1, h1_dim), lambda i: (0, 0)),        # b1
                pl.BlockSpec((h1_dim, h2_dim), lambda i: (0, 0)),   # W2
                pl.BlockSpec((1, h2_dim), lambda i: (0, 0)),        # b2
                pl.BlockSpec((h2_dim, out_pad), lambda i: (0, 0)),  # W3 (padded)
                pl.BlockSpec((1, out_pad), lambda i: (0, 0)),       # b3 (padded)
            ],
            out_specs=pl.BlockSpec((TB, out_pad), lambda i: (i, 0)),
        ),
        compiler_params=pltpu.CompilerParams(
            dimension_semantics=("parallel",),
            vmem_limit_bytes=32 * 1024 * 1024,
        ),
        cost_estimate=pl.CostEstimate(
            flops=flops, transcendentals=0, bytes_accessed=bytes_accessed),
    )(x, w1, b1, w2, b2, w3, b3)

    # Padded output lanes are exact zeros (W3/b3 zero-padded); slice them off.
    out = out[:, :out_dim]
    return out.reshape(-1, latent_dim, categorical_dim)


def init_params(key, latent_dim, categorical_dim):
    """Deterministic init mimicking nn.Linear's U(-1/sqrt(fan_in), 1/sqrt(fan_in)).

    Weights are stored pre-transposed as (in, out) so each layer is x @ W + b
    (identical math to PyTorch's x @ W.T + b).
    """
    out_dim = latent_dim * categorical_dim
    dims = [(784, 512), (512, 256), (256, out_dim)]
    params = []
    for (fan_in, fan_out) in dims:
        key, kw, kb = jax.random.split(key, 3)
        bound = 1.0 / (fan_in ** 0.5)
        w = jax.random.uniform(kw, (fan_in, fan_out), jnp.float32,
                               minval=-bound, maxval=bound)
        b = jax.random.uniform(kb, (1, fan_out), jnp.float32,
                               minval=-bound, maxval=bound)
        params += [w, b]
    return tuple(params)


def _reference_f32(x, params):
    w1, b1, w2, b2, w3, b3 = params
    h1 = jnp.maximum(x @ w1 + b1, 0.0)
    h2 = jnp.maximum(h1 @ w2 + b2, 0.0)
    return h2 @ w3 + b3


def _reference_bf16(x, params):
    """Mimics the kernel's bf16-operand / f32-accum numerics."""
    w1, b1, w2, b2, w3, b3 = params
    xb = x.astype(jnp.bfloat16)
    h1 = jnp.maximum(
        jnp.dot(xb, w1.astype(jnp.bfloat16),
                preferred_element_type=jnp.float32) + b1, 0.0).astype(jnp.bfloat16)
    h2 = jnp.maximum(
        jnp.dot(h1, w2.astype(jnp.bfloat16),
                preferred_element_type=jnp.float32) + b2, 0.0).astype(jnp.bfloat16)
    return jnp.dot(h2, w3.astype(jnp.bfloat16),
                   preferred_element_type=jnp.float32) + b3


if __name__ == "__main__":
    latent_dim = 4
    categorical_dim = 8
    batch = 8

    key = jax.random.PRNGKey(0)
    key, kx = jax.random.split(key)
    x = jax.random.normal(kx, (batch, 784), jnp.float32)
    params = init_params(key, latent_dim, categorical_dim)
    kparams = prepare_params(params, latent_dim, categorical_dim)

    out = encoder_forward(x, kparams, latent_dim, categorical_dim)
    out = jax.block_until_ready(out)

    assert out.shape == (batch, latent_dim, categorical_dim), out.shape

    out_flat = out.reshape(batch, -1)

    # Tight check against a reference with matching bf16-operand numerics.
    ref_bf16 = _reference_bf16(x, params)
    assert jnp.allclose(out_flat, ref_bf16, atol=1e-2, rtol=1e-2), (
        float(jnp.max(jnp.abs(out_flat - ref_bf16))))

    # Looser check against the pure-f32 PyTorch-equivalent math.
    ref_f32 = _reference_f32(x, params)
    assert jnp.allclose(out_flat, ref_f32, atol=7e-2, rtol=7e-2), (
        float(jnp.max(jnp.abs(out_flat - ref_f32))))

    print("KERNEL_OK")
</pallas_src>

<mosaic_0001>
module attributes {stable_mosaic.version = 11 : i64} {
  func.func @_encoder_kernel(%arg0: i32, %arg1: memref<8x784xf32, #tpu.memory_space<vmem>>, %arg2: memref<784x512xbf16, #tpu.memory_space<vmem>>, %arg3: memref<1x512xf32, #tpu.memory_space<vmem>>, %arg4: memref<512x256xbf16, #tpu.memory_space<vmem>>, %arg5: memref<1x256xf32, #tpu.memory_space<vmem>>, %arg6: memref<256x128xbf16, #tpu.memory_space<vmem>>, %arg7: memref<1x128xf32, #tpu.memory_space<vmem>>, %arg8: memref<8x128xf32, #tpu.memory_space<vmem>>) attributes {dimension_semantics = [#tpu.dimension_semantics<parallel>], iteration_bounds = array<i64: 1>, scalar_prefetch = 0 : i64, scratch_operands = 0 : i64, tpu.core_type = #tpu.core_type<tc>, window_params = [{transform_indices = @transform_0, window_bounds = array<i64: 8, 784>}, {pipeline_mode = #tpu.pipeline_mode<synchronous>, transform_indices = @transform_1, window_bounds = array<i64: 784, 512>}, {pipeline_mode = #tpu.pipeline_mode<synchronous>, transform_indices = @transform_2, window_bounds = array<i64: 1, 512>}, {pipeline_mode = #tpu.pipeline_mode<synchronous>, transform_indices = @transform_3, window_bounds = array<i64: 512, 256>}, {pipeline_mode = #tpu.pipeline_mode<synchronous>, transform_indices = @transform_4, window_bounds = array<i64: 1, 256>}, {pipeline_mode = #tpu.pipeline_mode<synchronous>, transform_indices = @transform_5, window_bounds = array<i64: 256, 128>}, {pipeline_mode = #tpu.pipeline_mode<synchronous>, transform_indices = @transform_6, window_bounds = array<i64: 1, 128>}, {transform_indices = @transform_7, window_bounds = array<i64: 8, 128>}]} {
    %c0 = arith.constant 0 : index
    %c0_0 = arith.constant 0 : index
    %0 = vector.load %arg1[%c0, %c0_0] : memref<8x784xf32, #tpu.memory_space<vmem>>, vector<8x784xf32>
    %1 = arith.truncf %0 : vector<8x784xf32> to vector<8x784xbf16>
    %c0_1 = arith.constant 0 : index
    %c0_2 = arith.constant 0 : index
    %2 = vector.load %arg2[%c0_1, %c0_2] : memref<784x512xbf16, #tpu.memory_space<vmem>>, vector<784x512xbf16>
    %cst = arith.constant dense<0.000000e+00> : vector<8x512xf32>
    %3 = tpu.matmul %1, %2, %cst {dimension_numbers = #tpu.dot_dimension_numbers<[1], [0], [0], [1], [0, 0, 1, 1], [], []>} : vector<8x784xbf16>, vector<784x512xbf16>, vector<8x512xf32> -> vector<8x512xf32>
    %c0_3 = arith.constant 0 : index
    %c0_4 = arith.constant 0 : index
    %4 = vector.load %arg3[%c0_3, %c0_4] : memref<1x512xf32, #tpu.memory_space<vmem>>, vector<1x512xf32>
    %5 = vector.broadcast %4 : vector<1x512xf32> to vector<8x512xf32>
    %6 = arith.addf %3, %5 : vector<8x512xf32>
    %cst_5 = arith.constant 0.000000e+00 : f32
    %7 = vector.broadcast %cst_5 : f32 to vector<8x512xf32>
    %8 = arith.maximumf %6, %7 : vector<8x512xf32>
    %9 = arith.truncf %8 : vector<8x512xf32> to vector<8x512xbf16>
    %c0_6 = arith.constant 0 : index
    %c0_7 = arith.constant 0 : index
    %10 = vector.load %arg4[%c0_6, %c0_7] : memref<512x256xbf16, #tpu.memory_space<vmem>>, vector<512x256xbf16>
    %cst_8 = arith.constant dense<0.000000e+00> : vector<8x256xf32>
    %11 = tpu.matmul %9, %10, %cst_8 {dimension_numbers = #tpu.dot_dimension_numbers<[1], [0], [0], [1], [0, 0, 1, 1], [], []>} : vector<8x512xbf16>, vector<512x256xbf16>, vector<8x256xf32> -> vector<8x256xf32>
    %c0_9 = arith.constant 0 : index
    %c0_10 = arith.constant 0 : index
    %12 = vector.load %arg5[%c0_9, %c0_10] : memref<1x256xf32, #tpu.memory_space<vmem>>, vector<1x256xf32>
    %13 = vector.broadcast %12 : vector<1x256xf32> to vector<8x256xf32>
    %14 = arith.addf %11, %13 : vector<8x256xf32>
    %cst_11 = arith.constant 0.000000e+00 : f32
    %15 = vector.broadcast %cst_11 : f32 to vector<8x256xf32>
    %16 = arith.maximumf %14, %15 : vector<8x256xf32>
    %17 = arith.truncf %16 : vector<8x256xf32> to vector<8x256xbf16>
    %c0_12 = arith.constant 0 : index
    %c0_13 = arith.constant 0 : index
    %18 = vector.load %arg6[%c0_12, %c0_13] : memref<256x128xbf16, #tpu.memory_space<vmem>>, vector<256x128xbf16>
    %cst_14 = arith.constant dense<0.000000e+00> : vector<8x128xf32>
    %19 = tpu.matmul %17, %18, %cst_14 {dimension_numbers = #tpu.dot_dimension_numbers<[1], [0], [0], [1], [0, 0, 1, 1], [], []>} : vector<8x256xbf16>, vector<256x128xbf16>, vector<8x128xf32> -> vector<8x128xf32>
    %c0_15 = arith.constant 0 : index
    %c0_16 = arith.constant 0 : index
    %20 = vector.load %arg7[%c0_15, %c0_16] : memref<1x128xf32, #tpu.memory_space<vmem>>, vector<1x128xf32>
    %21 = vector.broadcast %20 : vector<1x128xf32> to vector<8x128xf32>
    %22 = arith.addf %19, %21 : vector<8x128xf32>
    %c0_17 = arith.constant 0 : index
    %c0_18 = arith.constant 0 : index
    %23 = vector.load %arg8[%c0_17, %c0_18] : memref<8x128xf32, #tpu.memory_space<vmem>>, vector<8x128xf32>
    tpu.vector_store %arg8[%c0_17, %c0_18], %22 {strides = array<i32>} : memref<8x128xf32, #tpu.memory_space<vmem>>, vector<8x128xf32>,
    return
  }
  func.func @transform_0(%arg0: i32) -> (i32, i32) {
    %c0_i32 = arith.constant 0 : i32
    %c0_i32_0 = arith.constant 0 : i32
    return %arg0, %c0_i32 : i32, i32
  }
  func.func @transform_1(%arg0: i32) -> (i32, i32) {
    %c0_i32 = arith.constant 0 : i32
    %c0_i32_0 = arith.constant 0 : i32
    %c0_i32_1 = arith.constant 0 : i32
    return %c0_i32, %c0_i32_0 : i32, i32
  }
  func.func @transform_2(%arg0: i32) -> (i32, i32) {
    %c0_i32 = arith.constant 0 : i32
    %c0_i32_0 = arith.constant 0 : i32
    %c0_i32_1 = arith.constant 0 : i32
    return %c0_i32, %c0_i32_0 : i32, i32
  }
  func.func @transform_3(%arg0: i32) -> (i32, i32) {
    %c0_i32 = arith.constant 0 : i32
    %c0_i32_0 = arith.constant 0 : i32
    %c0_i32_1 = arith.constant 0 : i32
    return %c0_i32, %c0_i32_0 : i32, i32
  }
  func.func @transform_4(%arg0: i32) -> (i32, i32) {
    %c0_i32 = arith.constant 0 : i32
    %c0_i32_0 = arith.constant 0 : i32
    %c0_i32_1 = arith.constant 0 : i32
    return %c0_i32, %c0_i32_0 : i32, i32
  }
  func.func @transform_5(%arg0: i32) -> (i32, i32) {
    %c0_i32 = arith.constant 0 : i32
    %c0_i32_0 = arith.constant 0 : i32
    %c0_i32_1 = arith.constant 0 : i32
    return %c0_i32, %c0_i32_0 : i32, i32
  }
  func.func @transform_6(%arg0: i32) -> (i32, i32) {
    %c0_i32 = arith.constant 0 : i32
    %c0_i32_0 = arith.constant 0 : i32
    %c0_i32_1 = arith.constant 0 : i32
    return %c0_i32, %c0_i32_0 : i32, i32
  }
  func.func @transform_7(%arg0: i32) -> (i32, i32) {
    %c0_i32 = arith.constant 0 : i32
    %c0_i32_0 = arith.constant 0 : i32
    return %arg0, %c0_i32 : i32, i32
  }
}

</mosaic_0001>

<bundles_post_ra>
// kernel: encoder_forward.1
= control target key start
LH: loop header
LB: loop body
LE: loop exit
PB: predicated region body
PF: predicated region fallthrough
CT: control target
= control target key end

     0   :  { %12 = vsyncpa [#allocation3], 0  ;;  %s3300_s0 = inlined_call_operand.hbm [shape: f32[8,784], index: 0, kind: input, shape index: {}]   ;;  %s3301_s1 = inlined_call_operand.hbm [shape: bf16[784,512], index: 1, kind: input, shape index: {}]   ;;  %s3302_s2 = inlined_call_operand.vmem [shape: f32[1,512], index: 2, kind: input, shape index: {}]   ;;  %s3303_s3 = inlined_call_operand.hbm [shape: bf16[512,256], index: 3, kind: input, shape index: {}]   ;;  %s3304_s4 = inlined_call_operand.vmem [shape: f32[1,256], index: 4, kind: input, shape index: {}]   ;;  %s3305_s5 = inlined_call_operand.hbm [shape: bf16[256,128], index: 5, kind: input, shape index: {}]   ;;  %s3306_s6 = inlined_call_operand.vmem [shape: f32[1,128], index: 6, kind: input, shape index: {}]   ;;  %s3307_s7 = inlined_call_operand.vmem [shape: f32[8,128], index: 7, kind: output, shape index: {}]  }
   0x1   :  { %13 = vsyncpa [#allocation5], 0 }
   0x2   :  { %14 = vsyncpa [#allocation8], 0  ;;  %s3139_s24 = smov [#allocation4]   ;;  %s3045_s28 = scalar_lea.hbm %s3301_s1, 25088 }
   0x3   :  { %s30_s25 = sshll.u32 %s3139_s24, 4  ;;  %p3046_p0 = scmp.ne.s32.totalorder %s3301_s1, %s3045_s28  ;;  %s31_s25 = int_to_ptr.vmem [resolvable:$true] %s30_s25 }
   0x4   :  { %p3049_p1 = scmp.lt.u32.totalorder %s3045_s28, %s3301_s1 }
   0x6   :  { %p3051_p2 = pnand %p3049_p1, %p3046_p0 }
   0x8   :  { %3054 = shalt.err (!%p3051_p2)
}
   0x9   :  { %s3055_s10 = scalar_lea.vmem %s31_s25, 25088  ;;  %p3060_p4 = scmp.lt.s32.totalorder %s31_s25, %s31_s25 }
   0xa   :  { %p3056_p3 = scmp.ne.s32.totalorder %s31_s25, %s3055_s10  ;;  %p3061_p5 = scmp.lt.s32.totalorder %s3055_s10, %s3055_s10 }
   0xc   :  { %p3062_p6 = por %p3061_p5, %p3060_p4 }
   0xe   :  { %p3063_p7 = pnand %p3062_p6, %p3056_p3 }
  0x10   :  { %3066 = shalt.err (!%p3063_p7)
}
  0x11   :  { %s3140_s11 = smov 256   ;;  %s3141_s12 = smov 16  }
  0x12   :  { %36 = dma.hbm_to_vmem [thread:$0]  %s3301_s1, 25088, %s31_s25, [#allocation5], %s3140_s11, %s3140_s11, %s3141_s12  }
  0x13   :  { %s3142_s15 = smov [#allocation2]   ;;  %s3143_s17 = smov [#allocation6]  }
  0x14   :  { %s21_s16 = sshll.u32 %s3142_s15, 4  ;;  %s44_s18 = sshll.u32 %s3143_s17, 4  ;;  %s22_s16 = int_to_ptr.vmem [resolvable:$true] %s21_s16  ;;  %s45_s18 = int_to_ptr.vmem [resolvable:$true] %s44_s18 }
  0x15   :  { %s3067_s21 = scalar_lea.hbm %s3300_s0, 896 }
  0x16   :  { %p3068_p8 = scmp.ne.s32.totalorder %s3300_s0, %s3067_s21  ;;  %p3071_p9 = scmp.lt.u32.totalorder %s3067_s21, %s3300_s0 }
  0x18   :  { %p3073_p10 = pnand %p3071_p9, %p3068_p8 }
  0x1a   :  { %3076 = shalt.err (!%p3073_p10)
}
  0x1b   :  { %s3077_s1 = scalar_lea.vmem %s22_s16, 896  ;;  %p3082_p12 = scmp.lt.s32.totalorder %s22_s16, %s22_s16 }
  0x1c   :  { %p3078_p11 = scmp.ne.s32.totalorder %s22_s16, %s3077_s1  ;;  %p3083_p13 = scmp.lt.s32.totalorder %s3077_s1, %s3077_s1 }
  0x1e   :  { %p3084_p0 = por %p3083_p13, %p3082_p12 }
  0x20   :  { %p3085_p1 = pnand %p3084_p0, %p3078_p11 }
  0x22   :  { %3088 = shalt.err (!%p3085_p1)
}
  0x23   :  { %24 = dma.hbm_to_vmem [thread:$0]  %s3300_s0, 896, %s22_s16, [#allocation3]  }
  0x24   :  { %s3089_s30 = scalar_lea.hbm %s3303_s3, 8192 }
  0x25   :  { %p3090_p2 = scmp.ne.s32.totalorder %s3303_s3, %s3089_s30  ;;  %p3093_p3 = scmp.lt.u32.totalorder %s3089_s30, %s3303_s3 }
  0x27   :  { %p3095_p4 = pnand %p3093_p3, %p3090_p2 }
  0x29   :  { %3098 = shalt.err (!%p3095_p4)
}
  0x2a   :  { %s3099_s12 = scalar_lea.vmem %s45_s18, 8192  ;;  %p3104_p6 = scmp.lt.s32.totalorder %s45_s18, %s45_s18 }
  0x2b   :  { %p3100_p5 = scmp.ne.s32.totalorder %s45_s18, %s3099_s12  ;;  %p3105_p7 = scmp.lt.s32.totalorder %s3099_s12, %s3099_s12 }
  0x2d   :  { %p3106_p8 = por %p3105_p7, %p3104_p6 }
  0x2f   :  { %p3107_p9 = pnand %p3106_p8, %p3100_p5 }
  0x31   :  { %3110 = shalt.err (!%p3107_p9)
}
  0x32   :  { %s3144_s0 = smov 128   ;;  %s3145_s13 = smov 8  }
  0x33   :  { %50 = dma.hbm_to_vmem [thread:$0]  %s3303_s3, 8192, %s45_s18, [#allocation5], %s3144_s0, %s3144_s0, %s3145_s13  }
  0x34   :  { %s3146_s16 = smov [#allocation7]   ;;  %s3111_s21 = scalar_lea.hbm %s3305_s5, 2048 }
  0x35   :  { %s58_s17 = sshll.u32 %s3146_s16, 4  ;;  %p3112_p10 = scmp.ne.s32.totalorder %s3305_s5, %s3111_s21  ;;  %s59_s17 = int_to_ptr.vmem [resolvable:$true] %s58_s17 }
  0x36   :  { %p3115_p11 = scmp.lt.u32.totalorder %s3111_s21, %s3305_s5 }
  0x38   :  { %p3117_p12 = pnand %p3115_p11, %p3112_p10 }
  0x3a   :  { %3120 = shalt.err (!%p3117_p12)
}
  0x3b   :  { %s3121_s1 = scalar_lea.vmem %s59_s17, 2048  ;;  %p3126_p0 = scmp.lt.s32.totalorder %s59_s17, %s59_s17 }
  0x3c   :  { %p3122_p13 = scmp.ne.s32.totalorder %s59_s17, %s3121_s1  ;;  %p3127_p1 = scmp.lt.s32.totalorder %s3121_s1, %s3121_s1 }
  0x3e   :  { %p3128_p2 = por %p3127_p1, %p3126_p0 }
  0x40   :  { %p3129_p3 = pnand %p3128_p2, %p3122_p13 }
  0x42   :  { %3132 = shalt.err (!%p3129_p3)
}
  0x43   :  { %s3147_s3 = smov 64   ;;  %s3148_s18 = smov 4  }
  0x44   :  { %64 = dma.hbm_to_vmem [thread:$0]  %s3305_s5, 2048, %s59_s17, [#allocation8], %s3147_s3, %s3147_s3, %s3148_s18  }
  0x45   :  { %3133 = dma.done.wait [#allocation3], 896  }
  0x46   :  { %3134 = vsyncadd [#allocation3], 4294966400 }
  0x47   :  { %3135 = dma.done.wait [#allocation5], 33280  }
  0x48   :  { %3136 = vsyncadd [#allocation5], 4294934016 }
  0x49   :  { %3137 = dma.done.wait [#allocation8], 2048  }
  0x4a   :  { %3138 = vsyncadd [#allocation8], 4294965248  ;;  %v2639_v0 = vld [vmem:[#allocation4 + $0x4] ss:$16 sps:$4 sm:$0xff]   ;;  %v2643_v2 = vld [vmem:[#allocation4] ss:$16 sps:$4 sm:$0xff]  }
  0x4b   :  { %v2641_v1 = vld [vmem:[#allocation4 + $0x204] ss:$16 sps:$4 sm:$0xff]   ;;  %1296 = vmatprep.subr.bf16.mxu1 %v2639_v0  ;;  %v2644_v3 = vld [vmem:[#allocation4 + $0x200] ss:$16 sps:$4 sm:$0xff]   ;;  %vm1292_vm0 = vcmask 130048  }
  0x4c   :  { %1337 = vmatprep.subr.bf16.mxu0 %v2641_v1  ;;  %v2645_v4 = vld [vmem:[#allocation4 + $0x24] ss:$16 sps:$4 sm:$0xff]   ;;  %1297 = vmatpush1.bf16.msra.mxu1 %v2643_v2  ;;  %v2649_v6 = vld [vmem:[#allocation4 + $0x20] ss:$16 sps:$4 sm:$0xff]  }
  0x4d   :  { %1338 = vmatpush1.bf16.msra.mxu0 %v2644_v3  ;;  %v2647_v5 = vld [vmem:[#allocation4 + $0x224] ss:$16 sps:$4 sm:$0xff]   ;;  %1298 = vmatprep.subr.bf16.mxu1 %v2645_v4  ;;  %v2650_v7 = vld [vmem:[#allocation4 + $0x220] ss:$16 sps:$4 sm:$0xff]   ;;  %v80_v4 = vld [vmem:[#allocation2] sm:$0xff] }
  0x4e   :  { %1339 = vmatprep.subr.bf16.mxu0 %v2647_v5  ;;  %v2651_v8 = vld [vmem:[#allocation4 + $0x44] ss:$16 sps:$4 sm:$0xff]   ;;  %v2655_v10 = vld [vmem:[#allocation4 + $0x40] ss:$16 sps:$4 sm:$0xff]  }
  0x4f   :  { %v2653_v9 = vld [vmem:[#allocation4 + $0x244] ss:$16 sps:$4 sm:$0xff]   ;;  %v2656_v11 = vld [vmem:[#allocation4 + $0x240] ss:$16 sps:$4 sm:$0xff]  }
  0x50   :  { %1299 = vmatpush1.bf16.msra.mxu1 %v2649_v6  ;;  %v2657_v12 = vld [vmem:[#allocation4 + $0x64] ss:$16 sps:$4 sm:$0xff]   ;;  %v2661_v14 = vld [vmem:[#allocation4 + $0x60] ss:$16 sps:$4 sm:$0xff]   ;;  %v82_v6 = vld [vmem:[#allocation2 + $0x10] sm:$0xff] }
  0x51   :  { %1340 = vmatpush1.bf16.msra.mxu0 %v2650_v7  ;;  %1300 = vmatprep.subr.bf16.mxu1 %v2651_v8  ;;  %v2659_v13 = vld [vmem:[#allocation4 + $0x264] ss:$16 sps:$4 sm:$0xff]   ;;  %v2662_v15 = vld [vmem:[#allocation4 + $0x260] ss:$16 sps:$4 sm:$0xff]   ;;  %v2740_v7 = vld [vmem:[#allocation4 + $0xc] ss:$16 sps:$4 sm:$0xff]   ;;  %v3244_v8 = vpack.c.bf16 %v80_v4, %v80_v4 }
  0x52   :  { %1341 = vmatprep.subr.bf16.mxu0 %v2653_v9  ;;  %v2663_v16 = vld [vmem:[#allocation4 + $0x84] ss:$16 sps:$4 sm:$0xff]   ;;  %v2667_v18 = vld [vmem:[#allocation4 + $0x80] ss:$16 sps:$4 sm:$0xff]   ;;  %v2824_v4 = vld [vmem:[#allocation4 + $0x1cc] ss:$16 sps:$4 sm:$0xff]  }
  0x53   :  { %v2665_v17 = vld [vmem:[#allocation4 + $0x284] ss:$16 sps:$4 sm:$0xff]   ;;  %v2668_v19 = vld [vmem:[#allocation4 + $0x280] ss:$16 sps:$4 sm:$0xff]  }
  0x54   :  { %1301 = vmatpush1.bf16.msra.mxu1 %v2655_v10  ;;  %v2669_v20 = vld [vmem:[#allocation4 + $0xa4] ss:$16 sps:$4 sm:$0xff]   ;;  %v2673_v22 = vld [vmem:[#allocation4 + $0xa0] ss:$16 sps:$4 sm:$0xff]   ;;  %v2738_v10 = vld [vmem:[#allocation4 + $0x8] ss:$16 sps:$4 sm:$0xff]  }
  0x55   :  { %1342 = vmatpush1.bf16.msra.mxu0 %v2656_v11  ;;  %1302 = vmatprep.subr.bf16.mxu1 %v2657_v12  ;;  %v2671_v21 = vld [vmem:[#allocation4 + $0x2a4] ss:$16 sps:$4 sm:$0xff]   ;;  %v2674_v23 = vld [vmem:[#allocation4 + $0x2a0] ss:$16 sps:$4 sm:$0xff]   ;;  %v3246_v11 = vpack.c.bf16 %v82_v6, %v82_v6  ;;  %v2822_v6 = vld [vmem:[#allocation4 + $0x1c8] ss:$16 sps:$4 sm:$0xff]  }
  0x56   :  { %1343 = vmatprep.subr.bf16.mxu0 %v2659_v13  ;;  %v2675_v24 = vld [vmem:[#allocation4 + $0xc4] ss:$16 sps:$4 sm:$0xff]   ;;  %v2679_v26 = vld [vmem:[#allocation4 + $0xc0] ss:$16 sps:$4 sm:$0xff]   ;;  %v2746_v13 = vld [vmem:[#allocation4 + $0x2c] ss:$16 sps:$4 sm:$0xff]  }
  0x57   :  { %v2677_v25 = vld [vmem:[#allocation4 + $0x2c4] ss:$16 sps:$4 sm:$0xff]   ;;  %v2680_v27 = vld [vmem:[#allocation4 + $0x2c0] ss:$16 sps:$4 sm:$0xff]  }
  0x58   :  { %1303 = vmatpush1.bf16.msra.mxu1 %v2661_v14  ;;  %v2681_v28 = vld [vmem:[#allocation4 + $0xe4] ss:$16 sps:$4 sm:$0xff]   ;;  %v2685_v30 = vld [vmem:[#allocation4 + $0xe0] ss:$16 sps:$4 sm:$0xff]  }
  0x59   :  { %1344 = vmatpush1.bf16.msra.mxu0 %v2662_v15  ;;  %1304 = vmatprep.subr.bf16.mxu1 %v2663_v16  ;;  %v2683_v29 = vld [vmem:[#allocation4 + $0x2e4] ss:$16 sps:$4 sm:$0xff]   ;;  %v2686_v31 = vld [vmem:[#allocation4 + $0x2e0] ss:$16 sps:$4 sm:$0xff]   ;;  %v2744_v15 = vld [vmem:[#allocation4 + $0x28] ss:$16 sps:$4 sm:$0xff]  }
  0x5a   :  { %1345 = vmatprep.subr.bf16.mxu0 %v2665_v17  ;;  %v2687_v32 = vld [vmem:[#allocation4 + $0x104] ss:$16 sps:$4 sm:$0xff]   ;;  %v2691_v34 = vld [vmem:[#allocation4 + $0x100] ss:$16 sps:$4 sm:$0xff]   ;;  %v2752_v17 = vld [vmem:[#allocation4 + $0x4c] ss:$16 sps:$4 sm:$0xff]  }
  0x5b   :  { %v2689_v33 = vld [vmem:[#allocation4 + $0x304] ss:$16 sps:$4 sm:$0xff]   ;;  %v2692_v35 = vld [vmem:[#allocation4 + $0x300] ss:$16 sps:$4 sm:$0xff]  }
  0x5c   :  { %1305 = vmatpush1.bf16.msra.mxu1 %v2667_v18  ;;  %v2693_v36 = vld [vmem:[#allocation4 + $0x124] ss:$16 sps:$4 sm:$0xff]   ;;  %v2697_v38 = vld [vmem:[#allocation4 + $0x120] ss:$16 sps:$4 sm:$0xff]  }
  0x5d   :  { %1346 = vmatpush1.bf16.msra.mxu0 %v2668_v19  ;;  %1306 = vmatprep.subr.bf16.mxu1 %v2669_v20  ;;  %v2695_v37 = vld [vmem:[#allocation4 + $0x324] ss:$16 sps:$4 sm:$0xff]   ;;  %v2698_v39 = vld [vmem:[#allocation4 + $0x320] ss:$16 sps:$4 sm:$0xff]   ;;  %v2750_v19 = vld [vmem:[#allocation4 + $0x48] ss:$16 sps:$4 sm:$0xff]  }
  0x5e   :  { %1347 = vmatprep.subr.bf16.mxu0 %v2671_v21  ;;  %v2699_v40 = vld [vmem:[#allocation4 + $0x144] ss:$16 sps:$4 sm:$0xff]   ;;  %v2703_v42 = vld [vmem:[#allocation4 + $0x140] ss:$16 sps:$4 sm:$0xff]   ;;  %v2758_v21 = vld [vmem:[#allocation4 + $0x6c] ss:$16 sps:$4 sm:$0xff]  }
  0x5f   :  { %v2701_v41 = vld [vmem:[#allocation4 + $0x344] ss:$16 sps:$4 sm:$0xff]   ;;  %v2704_v43 = vld [vmem:[#allocation4 + $0x340] ss:$16 sps:$4 sm:$0xff]  }
  0x60   :  { %1307 = vmatpush1.bf16.msra.mxu1 %v2673_v22  ;;  %v2705_v44 = vld [vmem:[#allocation4 + $0x164] ss:$16 sps:$4 sm:$0xff]   ;;  %v2709_v47 = vld [vmem:[#allocation4 + $0x160] ss:$16 sps:$4 sm:$0xff]  }
  0x61   :  { %1348 = vmatpush1.bf16.msra.mxu0 %v2674_v23  ;;  %1308 = vmatprep.subr.bf16.mxu1 %v2675_v24  ;;  %v2707_v45 = vld [vmem:[#allocation4 + $0x364] ss:$16 sps:$4 sm:$0xff]   ;;  %v2710_v50 = vld [vmem:[#allocation4 + $0x360] ss:$16 sps:$4 sm:$0xff]   ;;  %v2756_v23 = vld [vmem:[#allocation4 + $0x68] ss:$16 sps:$4 sm:$0xff]  }
  0x62   :  { %1349 = vmatprep.subr.bf16.mxu0 %v2677_v25  ;;  %v81_v46 = vld [vmem:[#allocation2 + $0x8] sm:$0xff]  ;;  %v83_v49 = vld [vmem:[#allocation2 + $0x18] sm:$0xff]  ;;  %v2764_v25 = vld [vmem:[#allocation4 + $0x8c] ss:$16 sps:$4 sm:$0xff]  }
  0x63   :  { %v3238_v48 = vpack.c.bf16 %v81_v46, %v81_v46  ;;  %v2711_v51 = vld [vmem:[#allocation4 + $0x184] ss:$16 sps:$4 sm:$0xff]   ;;  %v3240_v52 = vpack.c.bf16 %v83_v49, %v83_v49  ;;  %v2715_v54 = vld [vmem:[#allocation4 + $0x180] ss:$16 sps:$4 sm:$0xff]   ;;  %v2792_v49 = vld [vmem:[#allocation4 + $0x128] ss:$16 sps:$4 sm:$0xff]  }
  0x64   :  { %1309 = vmatpush1.bf16.msra.mxu1 %v2679_v26  ;;  %v2713_v53 = vld [vmem:[#allocation4 + $0x384] ss:$16 sps:$4 sm:$0xff]   ;;  %v2716_v55 = vld [vmem:[#allocation4 + $0x380] ss:$16 sps:$4 sm:$0xff]  }
  0x65   :  { %1350 = vmatpush1.bf16.msra.mxu0 %v2680_v27  ;;  %1310 = vmatprep.subr.bf16.mxu1 %v2681_v28  ;;  %v2717_v56 = vld [vmem:[#allocation4 + $0x1a4] ss:$16 sps:$4 sm:$0xff]   ;;  %v2721_v58 = vld [vmem:[#allocation4 + $0x1a0] ss:$16 sps:$4 sm:$0xff]   ;;  %v2762_v27 = vld [vmem:[#allocation4 + $0x88] ss:$16 sps:$4 sm:$0xff]  }
  0x66   :  { %1351 = vmatprep.subr.bf16.mxu0 %v2683_v29  ;;  %1328 = vmatprep.mubr.bf16.mxu1 %v3238_v48  ;;  %v2719_v57 = vld [vmem:[#allocation4 + $0x3a4] ss:$16 sps:$4 sm:$0xff]   ;;  %v2722_v59 = vld [vmem:[#allocation4 + $0x3a0] ss:$16 sps:$4 sm:$0xff]   ;;  %v2770_v29 = vld [vmem:[#allocation4 + $0xac] ss:$16 sps:$4 sm:$0xff]  }
  0x67   :  { %1369 = vmatprep.mubr.bf16.mxu0 %v3240_v52  ;;  %v2723_v60 = vld [vmem:[#allocation4 + $0x1c4] ss:$16 sps:$4 sm:$0xff]   ;;  %v2727_v62 = vld [vmem:[#allocation4 + $0x1c0] ss:$16 sps:$4 sm:$0xff]  }
  0x68   :  { %1311 = vmatpush1.bf16.msra.mxu1 %v2685_v30  ;;  %v2725_v61 = vld [vmem:[#allocation4 + $0x3c4] ss:$16 sps:$4 sm:$0xff]   ;;  %v2728_v63 = vld [vmem:[#allocation4 + $0x3c0] ss:$16 sps:$4 sm:$0xff]  }
  0x69   :  { %1352 = vmatpush1.bf16.msra.mxu0 %v2686_v31  ;;  %1312 = vmatprep.subr.bf16.mxu1 %v2687_v32  ;;  %v2729_v0 = vld [vmem:[#allocation4 + $0x1e4] ss:$16 sps:$4 sm:$0xff]   ;;  %v2733_v2 = vld [vmem:[#allocation4 + $0x1e0] ss:$16 sps:$4 sm:$0xff]   ;;  %v2768_v31 = vld [vmem:[#allocation4 + $0xa8] ss:$16 sps:$4 sm:$0xff]  }
  0x6a   :  { %1353 = vmatprep.subr.bf16.mxu0 %v2689_v33  ;;  %v2731_v1 = vld [vmem:[#allocation4 + $0x3e4] ss:$16 sps:$4 sm:$0xff]   ;;  %v2734_v3 = vld [vmem:[#allocation4 + $0x3e0] ss:$16 sps:$4 sm:$0xff]   ;;  %v2776_v33 = vld [vmem:[#allocation4 + $0xcc] ss:$16 sps:$4 sm:$0xff]  }
  0x6b   :  { %v2737_v5 = vld [vmem:[#allocation4 + $0x404] ss:$16 sps:$4 sm:$0xff]   ;;  %v2735_v9 = vld [vmem:[#allocation4 + $0x400] ss:$16 sps:$4 sm:$0xff]  }
  0x6c   :  { %1313 = vmatpush1.bf16.msra.mxu1 %v2691_v34  ;;  %v2743_v12 = vld [vmem:[#allocation4 + $0x424] ss:$16 sps:$4 sm:$0xff]   ;;  %v2741_v14 = vld [vmem:[#allocation4 + $0x420] ss:$16 sps:$4 sm:$0xff]  }
  0x6d   :  { %1354 = vmatpush1.bf16.msra.mxu0 %v2692_v35  ;;  %1314 = vmatprep.subr.bf16.mxu1 %v2693_v36  ;;  %v2749_v16 = vld [vmem:[#allocation4 + $0x444] ss:$16 sps:$4 sm:$0xff]   ;;  %v2747_v18 = vld [vmem:[#allocation4 + $0x440] ss:$16 sps:$4 sm:$0xff]  }
  0x6e   :  { %1355 = vmatprep.subr.bf16.mxu0 %v2695_v37  ;;  %v2755_v20 = vld [vmem:[#allocation4 + $0x464] ss:$16 sps:$4 sm:$0xff]   ;;  %v2753_v22 = vld [vmem:[#allocation4 + $0x460] ss:$16 sps:$4 sm:$0xff]   ;;  %v2774_v37 = vld [vmem:[#allocation4 + $0xc8] ss:$16 sps:$4 sm:$0xff]  }
  0x6f   :  { %v2761_v24 = vld [vmem:[#allocation4 + $0x484] ss:$16 sps:$4 sm:$0xff]   ;;  %v2759_v26 = vld [vmem:[#allocation4 + $0x480] ss:$16 sps:$4 sm:$0xff]  }
  0x70   :  { %1315 = vmatpush1.bf16.msra.mxu1 %v2697_v38  ;;  %v2767_v28 = vld [vmem:[#allocation4 + $0x4a4] ss:$16 sps:$4 sm:$0xff]   ;;  %v2765_v30 = vld [vmem:[#allocation4 + $0x4a0] ss:$16 sps:$4 sm:$0xff]  }
  0x71   :  { %1356 = vmatpush1.bf16.msra.mxu0 %v2698_v39  ;;  %1316 = vmatprep.subr.bf16.mxu1 %v2699_v40  ;;  %v2773_v32 = vld [vmem:[#allocation4 + $0x4c4] ss:$16 sps:$4 sm:$0xff]   ;;  %v2771_v36 = vld [vmem:[#allocation4 + $0x4c0] ss:$16 sps:$4 sm:$0xff]   ;;  %v2782_v39 = vld [vmem:[#allocation4 + $0xec] ss:$16 sps:$4 sm:$0xff]  }
  0x72   :  { %1357 = vmatprep.subr.bf16.mxu0 %v2701_v41  ;;  %v85_v34 = vld [vmem:[#allocation2 + $0x28] sm:$0xff]  ;;  %v2780_v41 = vld [vmem:[#allocation4 + $0xe8] ss:$16 sps:$4 sm:$0xff]  }
  0x73   :  { %v3251_v35 = vpack.c.bf16 %v85_v34, %v85_v34  ;;  %v2779_v38 = vld [vmem:[#allocation4 + $0x4e4] ss:$16 sps:$4 sm:$0xff]   ;;  %v2777_v40 = vld [vmem:[#allocation4 + $0x4e0] ss:$16 sps:$4 sm:$0xff]   ;;  %v2857_v34 = vld [vmem:[#allocation4 + $0x2ec] ss:$16 sps:$4 sm:$0xff]  }
  0x74   :  { %1317 = vmatpush1.bf16.msra.mxu1 %v2703_v42  ;;  %v2785_v42 = vld [vmem:[#allocation4 + $0x504] ss:$16 sps:$4 sm:$0xff]  }
  0x75   :  { %1358 = vmatpush1.bf16.msra.mxu0 %v2704_v43  ;;  %1318 = vmatprep.subr.bf16.mxu1 %v2705_v44  ;;  %v2788_v43 = vld [vmem:[#allocation4 + $0x10c] ss:$16 sps:$4 sm:$0xff]   ;;  %v2783_v44 = vld [vmem:[#allocation4 + $0x500] ss:$16 sps:$4 sm:$0xff]   ;;  %v2791_v46 = vld [vmem:[#allocation4 + $0x524] ss:$16 sps:$4 sm:$0xff]  }
  0x76   :  { %1359 = vmatprep.subr.bf16.mxu0 %v2707_v45  ;;  %v2786_v45 = vld [vmem:[#allocation4 + $0x108] ss:$16 sps:$4 sm:$0xff]  }
  0x78   :  { %1319 = vmatpush1.bf16.msra.mxu1 %v2709_v47  ;;  %v2794_v47 = vld [vmem:[#allocation4 + $0x12c] ss:$16 sps:$4 sm:$0xff]  }
  0x79   :  { %1360 = vmatpush1.bf16.msra.mxu0 %v2710_v50  ;;  %1320 = vmatprep.subr.bf16.mxu1 %v2711_v51  ;;  %v2797_v50 = vld [vmem:[#allocation4 + $0x544] ss:$16 sps:$4 sm:$0xff]   ;;  %v2800_v51 = vld [vmem:[#allocation4 + $0x14c] ss:$16 sps:$4 sm:$0xff]  }
  0x7a   :  { %1361 = vmatprep.subr.bf16.mxu0 %v2713_v53  ;;  %v2795_v53 = vld [vmem:[#allocation4 + $0x540] ss:$16 sps:$4 sm:$0xff]  }
  0x7c   :  { %1321 = vmatpush1.bf16.msra.mxu1 %v2715_v54  ;;  %v2798_v54 = vld [vmem:[#allocation4 + $0x148] ss:$16 sps:$4 sm:$0xff]  }
  0x7d   :  { %1362 = vmatpush1.bf16.msra.mxu0 %v2716_v55  ;;  %1322 = vmatprep.subr.bf16.mxu1 %v2717_v56  ;;  %v2803_v55 = vld [vmem:[#allocation4 + $0x564] ss:$16 sps:$4 sm:$0xff]   ;;  %v2806_v56 = vld [vmem:[#allocation4 + $0x16c] ss:$16 sps:$4 sm:$0xff]  }
  0x7e   :  { %1363 = vmatprep.subr.bf16.mxu0 %v2719_v57  ;;  %v2801_v57 = vld [vmem:[#allocation4 + $0x560] ss:$16 sps:$4 sm:$0xff]  }
  0x80   :  { %1323 = vmatpush1.bf16.msra.mxu1 %v2721_v58  ;;  %v2804_v58 = vld [vmem:[#allocation4 + $0x168] ss:$16 sps:$4 sm:$0xff]  }
  0x81   :  { %1364 = vmatpush1.bf16.msra.mxu0 %v2722_v59  ;;  %1324 = vmatprep.subr.bf16.mxu1 %v2723_v60  ;;  %v2809_v59 = vld [vmem:[#allocation4 + $0x584] ss:$16 sps:$4 sm:$0xff]   ;;  %v2812_v60 = vld [vmem:[#allocation4 + $0x18c] ss:$16 sps:$4 sm:$0xff]  }
  0x82   :  { %1365 = vmatprep.subr.bf16.mxu0 %v2725_v61  ;;  %v2807_v61 = vld [vmem:[#allocation4 + $0x580] ss:$16 sps:$4 sm:$0xff]  }
  0x84   :  { %1325 = vmatpush1.bf16.msra.mxu1 %v2727_v62  ;;  %v2810_v62 = vld [vmem:[#allocation4 + $0x188] ss:$16 sps:$4 sm:$0xff]  }
  0x85   :  { %1366 = vmatpush1.bf16.msra.mxu0 %v2728_v63  ;;  %1326 = vmatprep.subr.bf16.mxu1 %v2729_v0  ;;  %v2815_v63 = vld [vmem:[#allocation4 + $0x5a4] ss:$16 sps:$4 sm:$0xff]   ;;  %v2818_v0 = vld [vmem:[#allocation4 + $0x1ac] ss:$16 sps:$4 sm:$0xff]  }
  0x86   :  { %1367 = vmatprep.subr.bf16.mxu0 %v2731_v1  ;;  %v2813_v1 = vld [vmem:[#allocation4 + $0x5a0] ss:$16 sps:$4 sm:$0xff]  }
  0x88   :  { %1327 = vmatpush1.bf16.msra.mxu1 %v2733_v2  ;;  %v2816_v2 = vld [vmem:[#allocation4 + $0x1a8] ss:$16 sps:$4 sm:$0xff]  }
  0x89   :  { %1368 = vmatpush1.bf16.msra.mxu0 %v2734_v3  ;;  %1460 = vmatprep.subr.bf16.mxu1 %v2740_v7  ;;  %v2821_v3 = vld [vmem:[#allocation4 + $0x5c4] ss:$16 sps:$4 sm:$0xff]  }
  0x8a   :  { %1378 = vmatprep.subr.bf16.mxu0 %v2737_v5  ;;  %v2819_v5 = vld [vmem:[#allocation4 + $0x5c0] ss:$16 sps:$4 sm:$0xff]   ;;  %v2827_v7 = vld [vmem:[#allocation4 + $0x5e4] ss:$16 sps:$4 sm:$0xff]  }
  0x8b   :  { %1329 = vmatmul.mubr.bf16.vlgmr.msra.gmra.mrb[0].mxu1 %v3244_v8 }
  0x8c   :  { %1370 = vmatmul.mubr.bf16.vlgmr.msra.gmra.mrb[0].mxu0 %v3246_v11  ;;  %1461 = vmatpush1.bf16.msra.mxu1 %v2738_v10  ;;  %v2825_v10 = vld [vmem:[#allocation4 + $0x5e0] ss:$16 sps:$4 sm:$0xff]  }
  0x8d   :  { %1379 = vmatpush1.bf16.msra.mxu0 %v2735_v9  ;;  %1462 = vmatprep.subr.bf16.mxu1 %v2746_v13  ;;  %v2830_v9 = vld [vmem:[#allocation4 + $0x1ec] ss:$16 sps:$4 sm:$0xff]  }
  0x8e   :  { %1380 = vmatprep.subr.bf16.mxu0 %v2743_v12  ;;  %1492 = vmatprep.mubr.bf16.mxu1 %v3238_v48  ;;  %v2789_v48 = vld [vmem:[#allocation4 + $0x520] ss:$16 sps:$4 sm:$0xff]   ;;  %v2828_v12 = vld [vmem:[#allocation4 + $0x1e8] ss:$16 sps:$4 sm:$0xff]  }
  0x8f   :  { %1410 = vmatprep.mubr.bf16.mxu0 %v3251_v35  ;;  %v84_v13 = vld [vmem:[#allocation2 + $0x20] sm:$0xff] }
  0x90   :  { %1463 = vmatpush1.bf16.msra.mxu1 %v2744_v15  ;;  %v2839_v15 = vld [vmem:[#allocation4 + $0x604] ss:$16 sps:$4 sm:$0xff]  }
  0x91   :  { %1381 = vmatpush1.bf16.msra.mxu0 %v2741_v14  ;;  %1464 = vmatprep.subr.bf16.mxu1 %v2752_v17  ;;  %v2833_v14 = vld [vmem:[#allocation4 + $0x20c] ss:$16 sps:$4 sm:$0xff]   ;;  %v2831_v17 = vld [vmem:[#allocation4 + $0x208] ss:$16 sps:$4 sm:$0xff]  }
  0x92   :  { %1382 = vmatprep.subr.bf16.mxu0 %v2749_v16  ;;  %v3254_v16 = vpack.c.bf16 %v84_v13, %v84_v13  ;;  %v2965_v13 = vld [vmem:[#allocation6 + $0xa4] ss:$8 sps:$4 sm:$0xff]  }
  0x94   :  { %1465 = vmatpush1.bf16.msra.mxu1 %v2750_v19  ;;  %v2836_v19 = vld [vmem:[#allocation4 + $0x22c] ss:$16 sps:$4 sm:$0xff]  }
  0x95   :  { %1383 = vmatpush1.bf16.msra.mxu0 %v2747_v18  ;;  %1466 = vmatprep.subr.bf16.mxu1 %v2758_v21  ;;  %v2837_v18 = vld [vmem:[#allocation4 + $0x600] ss:$16 sps:$4 sm:$0xff]   ;;  %v2834_v21 = vld [vmem:[#allocation4 + $0x228] ss:$16 sps:$4 sm:$0xff]  }
  0x96   :  { %1384 = vmatprep.subr.bf16.mxu0 %v2755_v20  ;;  %v2929_v20 = vld [vmem:[#allocation4 + $0x60c] ss:$16 sps:$4 sm:$0xff]  }
  0x98   :  { %1467 = vmatpush1.bf16.msra.mxu1 %v2756_v23  ;;  %v3149_v23 = vmov 0  }
  0x99   :  { %1385 = vmatpush1.bf16.msra.mxu0 %v2753_v22  ;;  %1468 = vmatprep.subr.bf16.mxu1 %v2764_v25  ;;  %v2842_v22 = vld [vmem:[#allocation4 + $0x24c] ss:$16 sps:$4 sm:$0xff]  }
  0x9a   :  { %1386 = vmatprep.subr.bf16.mxu0 %v2761_v24  ;;  %v2840_v24 = vld [vmem:[#allocation4 + $0x248] ss:$16 sps:$4 sm:$0xff]  }
  0x9b   :  { %v86_v25 = vld [vmem:[#allocation2 + $0x30] sm:$0xff] }
  0x9c   :  { %1469 = vmatpush1.bf16.msra.mxu1 %v2762_v27  ;;  %v2843_v27 = vld [vmem:[#allocation4 + $0x268] ss:$16 sps:$4 sm:$0xff]  }
  0x9d   :  { %1387 = vmatpush1.bf16.msra.mxu0 %v2759_v26  ;;  %1470 = vmatprep.subr.bf16.mxu1 %v2770_v29  ;;  %v2845_v26 = vld [vmem:[#allocation4 + $0x26c] ss:$16 sps:$4 sm:$0xff]   ;;  %v93_v29 = vpack.c.bf16 %v86_v25, %v86_v25  ;;  %v2969_v25 = vld [vmem:[#allocation6 + $0xc0] ss:$8 sps:$4 sm:$0xff]  }
  0x9e   :  { %1388 = vmatprep.subr.bf16.mxu0 %v2767_v28  ;;  %v2927_v28 = vld [vmem:[#allocation4 + $0x608] ss:$16 sps:$4 sm:$0xff]  }
  0xa0   :  { %1471 = vmatpush1.bf16.msra.mxu1 %v2768_v31  ;;  %v2851_v31 = vld [vmem:[#allocation4 + $0x2ac] ss:$16 sps:$4 sm:$0xff]  }
  0xa1   :  { %1389 = vmatpush1.bf16.msra.mxu0 %v2765_v30  ;;  %1472 = vmatprep.subr.bf16.mxu1 %v2776_v33  ;;  %v2846_v30 = vld [vmem:[#allocation4 + $0x288] ss:$16 sps:$4 sm:$0xff]  }
  0xa2   :  { %1390 = vmatprep.subr.bf16.mxu0 %v2773_v32  ;;  %v2849_v32 = vld [vmem:[#allocation4 + $0x2a8] ss:$16 sps:$4 sm:$0xff]  }
  0xa3   :  { %v2852_v33 = vld [vmem:[#allocation4 + $0x2c8] ss:$16 sps:$4 sm:$0xff]  }
  0xa4   :  { %1473 = vmatpush1.bf16.msra.mxu1 %v2774_v37  ;;  %v2935_v37 = vld [vmem:[#allocation6 + $0x4] ss:$8 sps:$4 sm:$0xff]  }
  0xa5   :  { %1391 = vmatpush1.bf16.msra.mxu0 %v2771_v36  ;;  %1474 = vmatprep.subr.bf16.mxu1 %v2782_v39  ;;  %v2933_v36 = vld [vmem:[#allocation6] ss:$8 sps:$4 sm:$0xff]  }
  0xa6   :  { %1392 = vmatprep.subr.bf16.mxu0 %v2779_v38  ;;  %v2938_v38 = vld [vmem:[#allocation6 + $0x14] ss:$8 sps:$4 sm:$0xff]   ;;  %v2855_v39 = vld [vmem:[#allocation4 + $0x2e8] ss:$16 sps:$4 sm:$0xff]  }
  0xa8   :  { %1475 = vmatpush1.bf16.msra.mxu1 %v2780_v41  ;;  %v2860_v41 = vld [vmem:[#allocation4 + $0x30c] ss:$16 sps:$4 sm:$0xff]  }
  0xa9   :  { %1393 = vmatpush1.bf16.msra.mxu0 %v2777_v40  ;;  %1476 = vmatprep.subr.bf16.mxu1 %v2788_v43  ;;  %v2936_v40 = vld [vmem:[#allocation6 + $0x10] ss:$8 sps:$4 sm:$0xff]  }
  0xaa   :  { %1394 = vmatprep.subr.bf16.mxu0 %v2785_v42  ;;  %v2941_v42 = vld [vmem:[#allocation6 + $0x24] ss:$8 sps:$4 sm:$0xff]   ;;  %v2858_v43 = vld [vmem:[#allocation4 + $0x308] ss:$16 sps:$4 sm:$0xff]  }
  0xac   :  { %1477 = vmatpush1.bf16.msra.mxu1 %v2786_v45  ;;  %v2863_v45 = vld [vmem:[#allocation4 + $0x32c] ss:$16 sps:$4 sm:$0xff]  }
  0xad   :  { %1395 = vmatpush1.bf16.msra.mxu0 %v2783_v44  ;;  %1478 = vmatprep.subr.bf16.mxu1 %v2794_v47  ;;  %v2939_v44 = vld [vmem:[#allocation6 + $0x20] ss:$8 sps:$4 sm:$0xff]  }
  0xae   :  { %1396 = vmatprep.subr.bf16.mxu0 %v2791_v46  ;;  %v2944_v46 = vld [vmem:[#allocation6 + $0x34] ss:$8 sps:$4 sm:$0xff]   ;;  %v2861_v47 = vld [vmem:[#allocation4 + $0x328] ss:$16 sps:$4 sm:$0xff]  }
  0xb0   :  { %1479 = vmatpush1.bf16.msra.mxu1 %v2792_v49  ;;  %v2866_v49 = vld [vmem:[#allocation4 + $0x34c] ss:$16 sps:$4 sm:$0xff]  }
  0xb1   :  { %1397 = vmatpush1.bf16.msra.mxu0 %v2789_v48  ;;  %1480 = vmatprep.subr.bf16.mxu1 %v2800_v51  ;;  %v2942_v48 = vld [vmem:[#allocation6 + $0x30] ss:$8 sps:$4 sm:$0xff]  }
  0xb2   :  { %1398 = vmatprep.subr.bf16.mxu0 %v2797_v50  ;;  %v2947_v50 = vld [vmem:[#allocation6 + $0x44] ss:$8 sps:$4 sm:$0xff]   ;;  %v2864_v51 = vld [vmem:[#allocation4 + $0x348] ss:$16 sps:$4 sm:$0xff]  }
  0xb4   :  { %1481 = vmatpush1.bf16.msra.mxu1 %v2798_v54  ;;  %v2869_v54 = vld [vmem:[#allocation4 + $0x36c] ss:$16 sps:$4 sm:$0xff]  }
  0xb5   :  { %1399 = vmatpush1.bf16.msra.mxu0 %v2795_v53  ;;  %1482 = vmatprep.subr.bf16.mxu1 %v2806_v56  ;;  %v2945_v53 = vld [vmem:[#allocation6 + $0x40] ss:$8 sps:$4 sm:$0xff]  }
  0xb6   :  { %1400 = vmatprep.subr.bf16.mxu0 %v2803_v55  ;;  %v2950_v55 = vld [vmem:[#allocation6 + $0x54] ss:$8 sps:$4 sm:$0xff]   ;;  %v2867_v56 = vld [vmem:[#allocation4 + $0x368] ss:$16 sps:$4 sm:$0xff]  }
  0xb8   :  { %1483 = vmatpush1.bf16.msra.mxu1 %v2804_v58  ;;  %v2872_v58 = vld [vmem:[#allocation4 + $0x38c] ss:$16 sps:$4 sm:$0xff]  }
  0xb9   :  { %1401 = vmatpush1.bf16.msra.mxu0 %v2801_v57  ;;  %1484 = vmatprep.subr.bf16.mxu1 %v2812_v60  ;;  %v2948_v57 = vld [vmem:[#allocation6 + $0x50] ss:$8 sps:$4 sm:$0xff]  }
  0xba   :  { %1402 = vmatprep.subr.bf16.mxu0 %v2809_v59  ;;  %v2953_v59 = vld [vmem:[#allocation6 + $0x64] ss:$8 sps:$4 sm:$0xff]   ;;  %v2870_v60 = vld [vmem:[#allocation4 + $0x388] ss:$16 sps:$4 sm:$0xff]  }
  0xbc   :  { %1485 = vmatpush1.bf16.msra.mxu1 %v2810_v62  ;;  %v2875_v62 = vld [vmem:[#allocation4 + $0x3ac] ss:$16 sps:$4 sm:$0xff]  }
  0xbd   :  { %1403 = vmatpush1.bf16.msra.mxu0 %v2807_v61  ;;  %1486 = vmatprep.subr.bf16.mxu1 %v2818_v0  ;;  %v2951_v61 = vld [vmem:[#allocation6 + $0x60] ss:$8 sps:$4 sm:$0xff]  }
  0xbe   :  { %1404 = vmatprep.subr.bf16.mxu0 %v2815_v63  ;;  %v2956_v63 = vld [vmem:[#allocation6 + $0x74] ss:$8 sps:$4 sm:$0xff]   ;;  %v2873_v0 = vld [vmem:[#allocation4 + $0x3a8] ss:$16 sps:$4 sm:$0xff]  }
  0xc0   :  { %1487 = vmatpush1.bf16.msra.mxu1 %v2816_v2  ;;  %v2878_v2 = vld [vmem:[#allocation4 + $0x3cc] ss:$16 sps:$4 sm:$0xff]  }
  0xc1   :  { %1405 = vmatpush1.bf16.msra.mxu0 %v2813_v1  ;;  %1488 = vmatprep.subr.bf16.mxu1 %v2824_v4  ;;  %v2954_v1 = vld [vmem:[#allocation6 + $0x70] ss:$8 sps:$4 sm:$0xff]  }
  0xc2   :  { %1406 = vmatprep.subr.bf16.mxu0 %v2821_v3  ;;  %v2959_v3 = vld [vmem:[#allocation6 + $0x84] ss:$8 sps:$4 sm:$0xff]   ;;  %v2876_v4 = vld [vmem:[#allocation4 + $0x3c8] ss:$16 sps:$4 sm:$0xff]  }
  0xc4   :  { %1489 = vmatpush1.bf16.msra.mxu1 %v2822_v6  ;;  %v2881_v6 = vld [vmem:[#allocation4 + $0x3ec] ss:$16 sps:$4 sm:$0xff]  }
  0xc5   :  { %1407 = vmatpush1.bf16.msra.mxu0 %v2819_v5  ;;  %1490 = vmatprep.subr.bf16.mxu1 %v2830_v9  ;;  %v2957_v5 = vld [vmem:[#allocation6 + $0x80] ss:$8 sps:$4 sm:$0xff]  }
  0xc6   :  { %1408 = vmatprep.subr.bf16.mxu0 %v2827_v7  ;;  %v2962_v7 = vld [vmem:[#allocation6 + $0x94] ss:$8 sps:$4 sm:$0xff]   ;;  %v2879_v9 = vld [vmem:[#allocation4 + $0x3e8] ss:$16 sps:$4 sm:$0xff]  }
  0xc8   :  { %1491 = vmatpush1.bf16.msra.mxu1 %v2828_v12  ;;  %v2884_v12 = vld [vmem:[#allocation4 + $0x40c] ss:$16 sps:$4 sm:$0xff]  }
  0xc9   :  { %1409 = vmatpush1.bf16.msra.mxu0 %v2825_v10  ;;  %1501 = vmatprep.subr.bf16.mxu1 %v2833_v14  ;;  %v2960_v10 = vld [vmem:[#allocation6 + $0x90] ss:$8 sps:$4 sm:$0xff]  }
  0xca   :  { %1419 = vmatprep.subr.bf16.mxu0 %v2839_v15  ;;  %v2882_v14 = vld [vmem:[#allocation4 + $0x408] ss:$16 sps:$4 sm:$0xff]   ;;  %v2887_v15 = vld [vmem:[#allocation4 + $0x42c] ss:$16 sps:$4 sm:$0xff]  }
  0xcb   :  { %1493 = vmatmul.mubr.bf16.vlgmr.msra.gmra.mrb[4].mxu1 %v3244_v8  ;;  %v2848_v8 = vld [vmem:[#allocation4 + $0x28c] ss:$16 sps:$4 sm:$0xff]  }
  0xcc   :  { %1411 = vmatmul.mubr.bf16.vlgmr.msra.gmra.mrb[0].mxu0 %v3254_v16  ;;  %1502 = vmatpush1.bf16.msra.mxu1 %v2831_v17  ;;  %v2963_v17 = vld [vmem:[#allocation6 + $0xa0] ss:$8 sps:$4 sm:$0xff]  }
  0xcd   :  { %1420 = vmatpush1.bf16.msra.mxu0 %v2837_v18  ;;  %1503 = vmatprep.subr.bf16.mxu1 %v2836_v19  ;;  %v2968_v18 = vld [vmem:[#allocation6 + $0xb4] ss:$8 sps:$4 sm:$0xff]   ;;  %v2885_v19 = vld [vmem:[#allocation4 + $0x428] ss:$16 sps:$4 sm:$0xff]  }
  0xce   :  { %1451 = vmatprep.mubr.bf16.mxu0 %v3149_v23  ;;  %1533 = vmatprep.mubr.bf16.mxu1 %v3240_v52  ;;  %v2854_v52 = vld [vmem:[#allocation4 + $0x2cc] ss:$16 sps:$4 sm:$0xff]  }
  0xcf   :  { %1583 = vmatprep.subr.bf16.mxu0 %v2929_v20  ;;  %v2890_v20 = vld [vmem:[#allocation4 + $0x44c] ss:$16 sps:$4 sm:$0xff]  }
  0xd0   :  { %1504 = vmatpush1.bf16.msra.mxu1 %v2834_v21  ;;  %v2966_v21 = vld [vmem:[#allocation6 + $0xb0] ss:$8 sps:$4 sm:$0xff]  }
  0xd1   :  { %1505 = vmatprep.subr.bf16.mxu1 %v2842_v22  ;;  %v2971_v22 = vld [vmem:[#allocation6 + $0xc4] ss:$8 sps:$4 sm:$0xff]  }
  0xd4   :  { %1506 = vmatpush1.bf16.msra.mxu1 %v2840_v24  ;;  %v2893_v24 = vld [vmem:[#allocation4 + $0x46c] ss:$16 sps:$4 sm:$0xff]  }
  0xd5   :  { %1507 = vmatprep.subr.bf16.mxu1 %v2845_v26  ;;  %v2974_v26 = vld [vmem:[#allocation6 + $0xd4] ss:$8 sps:$4 sm:$0xff]  }
  0xd8   :  { %2493 = vmatmul.mubr.msk.bf16.vlgmr.msra.gmra.mrb[0].mxu0 %vm1292_vm0, %v93_v29  ;;  %1508 = vmatpush1.bf16.msra.mxu1 %v2843_v27  ;;  %v2896_v27 = vld [vmem:[#allocation4 + $0x48c] ss:$16 sps:$4 sm:$0xff]  }
  0xd9   :  { %1584 = vmatpush1.bf16.msra.mxu0 %v2927_v28  ;;  %1509 = vmatprep.subr.bf16.mxu1 %v2848_v8  ;;  %v2894_v28 = vld [vmem:[#allocation4 + $0x488] ss:$16 sps:$4 sm:$0xff]  }
  0xda   :  { %1615 = vmatprep.mubr.bf16.mxu0 %v3149_v23  ;;  %2028 = vmatprep.subr.bf16.mxu0 %v2935_v37  ;;  %v2888_v23 = vld [vmem:[#allocation4 + $0x448] ss:$16 sps:$4 sm:$0xff]   ;;  %v2977_v37 = vld [vmem:[#allocation6 + $0xe4] ss:$8 sps:$4 sm:$0xff]  }
  0xdb   :  { %v2897_v8 = vld [vmem:[#allocation4 + $0x4a8] ss:$16 sps:$4 sm:$0xff]  }
  0xdc   :  { %1510 = vmatpush1.bf16.msra.mxu1 %v2846_v30  ;;  %v2902_v30 = vld [vmem:[#allocation4 + $0x4cc] ss:$16 sps:$4 sm:$0xff]  }
  0xdd   :  { %1511 = vmatprep.subr.bf16.mxu1 %v2851_v31  ;;  %v2900_v31 = vld [vmem:[#allocation4 + $0x4c8] ss:$16 sps:$4 sm:$0xff]  }
  0xe0   :  { %2494 = vmatmul.mubr.msk.bf16.vlgmr.msra.gmra.mrb[4].mxu0 %vm1292_vm0, %v93_v29  ;;  %1512 = vmatpush1.bf16.msra.mxu1 %v2849_v32  ;;  %v2899_v29 = vld [vmem:[#allocation4 + $0x4ac] ss:$16 sps:$4 sm:$0xff]  }
  0xe1   :  { %1513 = vmatprep.subr.bf16.mxu1 %v2854_v52  ;;  %2029 = vmatpush1.bf16.msra.mxu0 %v2933_v36  ;;  %v2905_v32 = vld [vmem:[#allocation4 + $0x4ec] ss:$16 sps:$4 sm:$0xff]   ;;  %v2903_v52 = vld [vmem:[#allocation4 + $0x4e8] ss:$16 sps:$4 sm:$0xff]  }
  0xe2   :  { %2030 = vmatprep.subr.bf16.mxu0 %v2938_v38  ;;  %v2911_v36 = vld [vmem:[#allocation4 + $0x52c] ss:$16 sps:$4 sm:$0xff]   ;;  %v2975_v38 = vld [vmem:[#allocation6 + $0xe0] ss:$8 sps:$4 sm:$0xff]  }
  0xe4   :  { %1514 = vmatpush1.bf16.msra.mxu1 %v2852_v33  ;;  %v2908_v33 = vld [vmem:[#allocation4 + $0x50c] ss:$16 sps:$4 sm:$0xff]  }
  0xe5   :  { %1515 = vmatprep.subr.bf16.mxu1 %v2857_v34  ;;  %2031 = vmatpush1.bf16.msra.mxu0 %v2936_v40  ;;  %v2906_v34 = vld [vmem:[#allocation4 + $0x508] ss:$16 sps:$4 sm:$0xff]   ;;  %v2914_v40 = vld [vmem:[#allocation4 + $0x54c] ss:$16 sps:$4 sm:$0xff]  }
  0xe6   :  { %2032 = vmatprep.subr.bf16.mxu0 %v2941_v42  ;;  %v2978_v42 = vld [vmem:[#allocation6 + $0xf0] ss:$8 sps:$4 sm:$0xff]  }
  0xe8   :  { %1516 = vmatpush1.bf16.msra.mxu1 %v2855_v39  ;;  %v2909_v39 = vld [vmem:[#allocation4 + $0x528] ss:$16 sps:$4 sm:$0xff]  }
  0xe9   :  { %1517 = vmatprep.subr.bf16.mxu1 %v2860_v41  ;;  %2033 = vmatpush1.bf16.msra.mxu0 %v2939_v44  ;;  %v2980_v41 = vld [vmem:[#allocation6 + $0xf4] ss:$8 sps:$4 sm:$0xff]  }
  0xea   :  { %2034 = vmatprep.subr.bf16.mxu0 %v2944_v46  ;;  %v2917_v44 = vld [vmem:[#allocation4 + $0x56c] ss:$16 sps:$4 sm:$0xff]   ;;  %v2915_v46 = vld [vmem:[#allocation4 + $0x568] ss:$16 sps:$4 sm:$0xff]  }
  0xec   :  { %1518 = vmatpush1.bf16.msra.mxu1 %v2858_v43  ;;  %v2912_v43 = vld [vmem:[#allocation4 + $0x548] ss:$16 sps:$4 sm:$0xff]  }
  0xed   :  { %1519 = vmatprep.subr.bf16.mxu1 %v2863_v45  ;;  %2035 = vmatpush1.bf16.msra.mxu0 %v2942_v48  ;;  %v2983_v45 = vld [vmem:[#allocation6 + $0x104] ss:$8 sps:$4 sm:$0xff]   ;;  %v2918_v48 = vld [vmem:[#allocation4 + $0x588] ss:$16 sps:$4 sm:$0xff]  }
  0xee   :  { %2036 = vmatprep.subr.bf16.mxu0 %v2947_v50  ;;  %v2921_v50 = vld [vmem:[#allocation4 + $0x5a8] ss:$16 sps:$4 sm:$0xff]  }
  0xf0   :  { %1520 = vmatpush1.bf16.msra.mxu1 %v2861_v47  ;;  %v2920_v47 = vld [vmem:[#allocation4 + $0x58c] ss:$16 sps:$4 sm:$0xff]  }
  0xf1   :  { %1521 = vmatprep.subr.bf16.mxu1 %v2866_v49  ;;  %2037 = vmatpush1.bf16.msra.mxu0 %v2945_v53  ;;  %v2923_v49 = vld [vmem:[#allocation4 + $0x5ac] ss:$16 sps:$4 sm:$0xff]   ;;  %v2924_v53 = vld [vmem:[#allocation4 + $0x5c8] ss:$16 sps:$4 sm:$0xff]  }
  0xf2   :  { %2038 = vmatprep.subr.bf16.mxu0 %v2950_v55  ;;  %v2930_v55 = vld [vmem:[#allocation4 + $0x5e8] ss:$16 sps:$4 sm:$0xff]  }
  0xf4   :  { %1522 = vmatpush1.bf16.msra.mxu1 %v2864_v51  ;;  %v2926_v51 = vld [vmem:[#allocation4 + $0x5cc] ss:$16 sps:$4 sm:$0xff]  }
  0xf5   :  { %1523 = vmatprep.subr.bf16.mxu1 %v2869_v54  ;;  %2039 = vmatpush1.bf16.msra.mxu0 %v2948_v57  ;;  %v2932_v54 = vld [vmem:[#allocation4 + $0x5ec] ss:$16 sps:$4 sm:$0xff]  }
  0xf6   :  { %2040 = vmatprep.subr.bf16.mxu0 %v2953_v59 }
  0xf8   :  { %1524 = vmatpush1.bf16.msra.mxu1 %v2867_v56 }
  0xf9   :  { %1525 = vmatprep.subr.bf16.mxu1 %v2872_v58  ;;  %2041 = vmatpush1.bf16.msra.mxu0 %v2951_v61 }
  0xfa   :  { %2042 = vmatprep.subr.bf16.mxu0 %v2956_v63  ;;  %v3268_v63 = vld [vmem:[%s3302_s2] sm:$0xf] }
  0xfc   :  { %1526 = vmatpush1.bf16.msra.mxu1 %v2870_v60  ;;  %v292_v60 = vlaneseq }
  0xfd   :  { %1527 = vmatprep.subr.bf16.mxu1 %v2875_v62  ;;  %2043 = vmatpush1.bf16.msra.mxu0 %v2954_v1 }
  0xfe   :  { %2044 = vmatprep.subr.bf16.mxu0 %v2959_v3  ;;  %v3262_v61 = vshrl.u32 %v292_v60, 7  ;;  %v3029_v3 = vld [vmem:[#allocation7 + $0x40] sm:$0xff]   ;;  %v3028_v60 = vld [vmem:[#allocation6 + $0x1f4] ss:$8 sps:$4 sm:$0xff]  }
 0x100   :  { %1528 = vmatpush1.bf16.msra.mxu1 %v2873_v0  ;;  %v294_v62 = vsub.s32 0, %v3262_v61  ;;  %v298_v0 = vsub.s32 1, %v3262_v61 }
 0x101   :  { %1529 = vmatprep.subr.bf16.mxu1 %v2878_v2  ;;  %2045 = vmatpush1.bf16.msra.mxu0 %v2957_v5  ;;  %v3031_v5 = vld [vmem:[#allocation7 + $0x48] sm:$0xff]  }
 0x102   :  { %2046 = vmatprep.subr.bf16.mxu0 %v2962_v7  ;;  %v299_v1 = vrot.slane %v3268_v63, %v298_v0 }
 0x104   :  { %1530 = vmatpush1.bf16.msra.mxu1 %v2876_v4  ;;  %v3030_v4 = vld [vmem:[#allocation7] sm:$0xff]  }
 0x105   :  { %1531 = vmatprep.subr.bf16.mxu1 %v2881_v6  ;;  %2047 = vmatpush1.bf16.msra.mxu0 %v2960_v10 }
 0x106   :  { %2048 = vmatprep.subr.bf16.mxu0 %v2965_v13 }
 0x108   :  { %1532 = vmatpush1.bf16.msra.mxu1 %v2879_v9 }
 0x109   :  { %1542 = vmatprep.subr.bf16.mxu1 %v2884_v12  ;;  %2049 = vmatpush1.bf16.msra.mxu0 %v2963_v17 }
 0x10a   :  { %2050 = vmatprep.subr.bf16.mxu0 %v2968_v18  ;;  %v3033_v18 = vld [vmem:[#allocation7 + $0x50] sm:$0xff]  }
 0x10b   :  { %1534 = vmatmul.mubr.bf16.vlgmr.msra.gmra.mrb[4].mxu1 %v3246_v11  ;;  %v2891_v11 = vld [vmem:[#allocation4 + $0x468] ss:$16 sps:$4 sm:$0xff]  }
 0x10c   :  { %1543 = vmatpush1.bf16.msra.mxu1 %v2882_v14  ;;  %1574 = vmatprep.mubr.bf16.mxu1 %v3251_v35  ;;  %v2972_v35 = vld [vmem:[#allocation6 + $0xd0] ss:$8 sps:$4 sm:$0xff]   ;;  %v3032_v14 = vld [vmem:[#allocation7 + $0x8] sm:$0xff]  }
 0x10d   :  { %1544 = vmatprep.subr.bf16.mxu1 %v2887_v15  ;;  %2051 = vmatpush1.bf16.msra.mxu0 %v2966_v21  ;;  %v2981_v21 = vld [vmem:[#allocation6 + $0x100] ss:$8 sps:$4 sm:$0xff]  }
 0x10e   :  { %2052 = vmatprep.subr.bf16.mxu0 %v2971_v22  ;;  %v3034_v22 = vld [vmem:[#allocation7 + $0x10] sm:$0xff]  }
 0x110   :  { %1545 = vmatpush1.bf16.msra.mxu1 %v2885_v19 }
 0x111   :  { %1546 = vmatprep.subr.bf16.mxu1 %v2890_v20  ;;  %2053 = vmatpush1.bf16.msra.mxu0 %v2969_v25  ;;  %v3035_v25 = vld [vmem:[#allocation7 + $0x58] sm:$0xff]  }
 0x112   :  { %2054 = vmatprep.subr.bf16.mxu0 %v2974_v26 }
 0x114   :  { %1547 = vmatpush1.bf16.msra.mxu1 %v2888_v23 }
 0x115   :  { %1548 = vmatprep.subr.bf16.mxu1 %v2893_v24  ;;  %2055 = vmatpush1.bf16.msra.mxu0 %v2972_v35  ;;  %v2986_v24 = vld [vmem:[#allocation6 + $0x114] ss:$8 sps:$4 sm:$0xff]  }
 0x116   :  { %2056 = vmatprep.subr.bf16.mxu0 %v2977_v37  ;;  %v2995_v37 = vld [vmem:[#allocation6 + $0x144] ss:$8 sps:$4 sm:$0xff]  }
 0x118   :  { %1549 = vmatpush1.bf16.msra.mxu1 %v2891_v11 }
 0x119   :  { %1550 = vmatprep.subr.bf16.mxu1 %v2896_v27  ;;  %2057 = vmatpush1.bf16.msra.mxu0 %v2975_v38  ;;  %v2984_v27 = vld [vmem:[#allocation6 + $0x110] ss:$8 sps:$4 sm:$0xff]   ;;  %v2993_v38 = vld [vmem:[#allocation6 + $0x140] ss:$8 sps:$4 sm:$0xff]  }
 0x11a   :  { %2058 = vmatprep.subr.bf16.mxu0 %v2980_v41  ;;  %v3001_v41 = vld [vmem:[#allocation6 + $0x164] ss:$8 sps:$4 sm:$0xff]  }
 0x11c   :  { %1551 = vmatpush1.bf16.msra.mxu1 %v2894_v28  ;;  %v3036_v28 = vld [vmem:[#allocation7 + $0x18] sm:$0xff]  }
 0x11d   :  { %1552 = vmatprep.subr.bf16.mxu1 %v2899_v29  ;;  %2059 = vmatpush1.bf16.msra.mxu0 %v2978_v42  ;;  %v2989_v29 = vld [vmem:[#allocation6 + $0x124] ss:$8 sps:$4 sm:$0xff]   ;;  %v2999_v42 = vld [vmem:[#allocation6 + $0x160] ss:$8 sps:$4 sm:$0xff]  }
 0x11e   :  { %2069 = vmatprep.subr.bf16.mxu0 %v2983_v45  ;;  %v3007_v45 = vld [vmem:[#allocation6 + $0x184] ss:$8 sps:$4 sm:$0xff]  }
 0x120   :  { %1553 = vmatpush1.bf16.msra.mxu1 %v2897_v8 }
 0x121   :  { %1554 = vmatprep.subr.bf16.mxu1 %v2902_v30  ;;  %v3037_v30 = vld [vmem:[#allocation7 + $0x60] sm:$0xff]  }
 0x124   :  { %1555 = vmatpush1.bf16.msra.mxu1 %v2900_v31  ;;  %v2987_v31 = vld [vmem:[#allocation6 + $0x120] ss:$8 sps:$4 sm:$0xff]  }
 0x125   :  { %1556 = vmatprep.subr.bf16.mxu1 %v2905_v32  ;;  %v3038_v32 = vld [vmem:[#allocation7 + $0x20] sm:$0xff]  }
 0x128   :  { %1557 = vmatpush1.bf16.msra.mxu1 %v2903_v52  ;;  %v2992_v52 = vld [vmem:[#allocation6 + $0x134] ss:$8 sps:$4 sm:$0xff]  }
 0x129   :  { %1558 = vmatprep.subr.bf16.mxu1 %v2908_v33  ;;  %v3039_v33 = vld [vmem:[#allocation7 + $0x68] sm:$0xff]  }
 0x12c   :  { %1559 = vmatpush1.bf16.msra.mxu1 %v2906_v34  ;;  %v2990_v34 = vld [vmem:[#allocation6 + $0x130] ss:$8 sps:$4 sm:$0xff]  }
 0x12d   :  { %1560 = vmatprep.subr.bf16.mxu1 %v2911_v36  ;;  %v3040_v36 = vld [vmem:[#allocation7 + $0x28] sm:$0xff]  }
 0x130   :  { %1561 = vmatpush1.bf16.msra.mxu1 %v2909_v39  ;;  %v2998_v39 = vld [vmem:[#allocation6 + $0x154] ss:$8 sps:$4 sm:$0xff]  }
 0x131   :  { %1562 = vmatprep.subr.bf16.mxu1 %v2914_v40  ;;  %v2996_v40 = vld [vmem:[#allocation6 + $0x150] ss:$8 sps:$4 sm:$0xff]  }
 0x134   :  { %1563 = vmatpush1.bf16.msra.mxu1 %v2912_v43  ;;  %v3004_v43 = vld [vmem:[#allocation6 + $0x174] ss:$8 sps:$4 sm:$0xff]  }
 0x135   :  { %1564 = vmatprep.subr.bf16.mxu1 %v2917_v44  ;;  %v3002_v44 = vld [vmem:[#allocation6 + $0x170] ss:$8 sps:$4 sm:$0xff]  }
 0x138   :  { %1565 = vmatpush1.bf16.msra.mxu1 %v2915_v46  ;;  %v3005_v46 = vld [vmem:[#allocation6 + $0x180] ss:$8 sps:$4 sm:$0xff]  }
 0x139   :  { %1566 = vmatprep.subr.bf16.mxu1 %v2920_v47  ;;  %v3010_v47 = vld [vmem:[#allocation6 + $0x194] ss:$8 sps:$4 sm:$0xff]  }
 0x13c   :  { %1567 = vmatpush1.bf16.msra.mxu1 %v2918_v48  ;;  %v3008_v48 = vld [vmem:[#allocation6 + $0x190] ss:$8 sps:$4 sm:$0xff]  }
 0x13d   :  { %1568 = vmatprep.subr.bf16.mxu1 %v2923_v49  ;;  %v3013_v49 = vld [vmem:[#allocation6 + $0x1a4] ss:$8 sps:$4 sm:$0xff]  }
 0x140   :  { %1569 = vmatpush1.bf16.msra.mxu1 %v2921_v50  ;;  %v3011_v50 = vld [vmem:[#allocation6 + $0x1a0] ss:$8 sps:$4 sm:$0xff]  }
 0x141   :  { %1570 = vmatprep.subr.bf16.mxu1 %v2926_v51  ;;  %v3016_v51 = vld [vmem:[#allocation6 + $0x1b4] ss:$8 sps:$4 sm:$0xff]  }
 0x144   :  { %1571 = vmatpush1.bf16.msra.mxu1 %v2924_v53  ;;  %v3014_v53 = vld [vmem:[#allocation6 + $0x1b0] ss:$8 sps:$4 sm:$0xff]  }
 0x145   :  { %1572 = vmatprep.subr.bf16.mxu1 %v2932_v54  ;;  %v3019_v54 = vld [vmem:[#allocation6 + $0x1c4] ss:$8 sps:$4 sm:$0xff]  }
 0x148   :  { %1573 = vmatpush1.bf16.msra.mxu1 %v2930_v55  ;;  %v3017_v55 = vld [vmem:[#allocation6 + $0x1c0] ss:$8 sps:$4 sm:$0xff]  }
 0x149   :  { %2576 = vmatprep.subr.bf16.mxu1 %v3029_v3 }
 0x14b   :  { %1575 = vmatmul.mubr.bf16.vlgmr.msra.gmra.mrb[4].mxu1 %v3254_v16  ;;  %v295_v16 = vrot.slane %v3268_v63, %v294_v62 }
 0x14c   :  { %2577 = vmatpush3.bf16.msra.mxu1 %v3030_v4 }
 0x14d   :  { %2578 = vmatprep.subr.bf16.mxu1 %v3031_v5 }
 0x150   :  { %2579 = vmatpush3.bf16.msra.mxu1 %v3032_v14 }
 0x151   :  { %2580 = vmatprep.subr.bf16.mxu1 %v3033_v18 }
 0x154   :  { %2581 = vmatpush3.bf16.msra.mxu1 %v3034_v22  ;;  %v3044_v22 = vld [vmem:[#allocation7 + $0x38] sm:$0xff]  }
 0x155   :  { %2582 = vmatprep.subr.bf16.mxu1 %v3035_v25 }
 0x158   :  { %2583 = vmatpush3.bf16.msra.mxu1 %v3036_v28 }
 0x159   :  { %2584 = vmatprep.subr.bf16.mxu1 %v3037_v30 }
 0x15c   :  { %2585 = vmatpush3.bf16.msra.mxu1 %v3038_v32 }
 0x15d   :  { %2586 = vmatprep.subr.bf16.mxu1 %v3039_v33 }
 0x15e   :  { %v1330_v56 = vpop.f32.mrb[0].mxu1 }
 0x15f   :  { %v1332_v57 = vpop.f32.mrb[1].mxu1  ;;  %v1331_v2 = vadd.f32 %v1330_v56, %v295_v16  ;;  %v3022_v56 = vld [vmem:[#allocation6 + $0x1d4] ss:$8 sps:$4 sm:$0xff]   ;;  %v3026_v16 = vld [vmem:[#allocation6 + $0x1f0] ss:$8 sps:$4 sm:$0xff]  }
 0x160   :  { %v1334_v58 = vpop.f32.mrb[2].mxu1  ;;  %v1333_v6 = vadd.f32 %v1332_v57, %v299_v1  ;;  %2587 = vmatpush3.bf16.msra.mxu1 %v3040_v36  ;;  %v3020_v57 = vld [vmem:[#allocation6 + $0x1d0] ss:$8 sps:$4 sm:$0xff]   ;;  %v302_v1 = vsub.s32 2, %v3262_v61 }
 0x161   :  { %v1335_v59 = vpop.f32.mrb[3].mxu1  ;;  %v3025_v58 = vld [vmem:[#allocation6 + $0x1e4] ss:$8 sps:$4 sm:$0xff]  }
 0x162   :  { %v3023_v59 = vld [vmem:[#allocation6 + $0x1e0] ss:$8 sps:$4 sm:$0xff]   ;;  %v303_v3 = vrot.slane %v3268_v63, %v302_v1 }
 0x1ab   :  { %v1453_v7 = vpop.f32.mrb[0].mxu0 }
 0x1ac   :  { %v2599_v9 = vadd.f32 %v1453_v7, %v1331_v2  ;;  %v1455_v10 = vpop.f32.mrb[1].mxu0  ;;  %v306_v2 = vsub.s32 3, %v3262_v61 }
 0x1ad   :  { %v2601_v12 = vadd.f32 %v1455_v10, %v1333_v6  ;;  %v1457_v13 = vpop.f32.mrb[2].mxu0 }
 0x1ae   :  { %v1624_v15 = vmax.f32 %v2599_v9, 0.0  ;;  %v1458_v17 = vpop.f32.mrb[3].mxu0  ;;  %v307_v4 = vrot.slane %v3268_v63, %v306_v2  ;;  %v3043_v63 = vld [vmem:[#allocation7 + $0x78] sm:$0xff]  }
 0x1af   :  { %v1625_v19 = vmax.f32 %v2601_v12, 0.0 }
 0x1b0   :  { %v1628_v23 = vpack.c.bf16 %v1624_v15, %v1624_v15 }
 0x1b1   :  { %v1629_v20 = vpack.c.bf16 %v1625_v19, %v1625_v19 }
 0x1b3   :  { %2060 = vmatprep.mubr.bf16.mxu0 %v1629_v20  ;;  %v3277_v26 = vpop.f32.mrb[4].mxu0  ;;  %v3041_v20 = vld [vmem:[#allocation7 + $0x70] sm:$0xff]  }
 0x1b4   :  { %2061 = vmatmul.mubr.bf16.vlgmr.msra.gmra.mrb[8].mxu0 %v1628_v23  ;;  %v3279_v11 = vpop.f32.mrb[5].mxu0  ;;  %2588 = vmatprep.subr.bf16.mxu1 %v3041_v20  ;;  %v1696_v23 = vld [vmem:[%s3304_s4] sm:$0x3] }
 0x1b5   :  { %2070 = vmatpush1.bf16.msra.mxu0 %v2981_v21  ;;  %v1621_v35 = vpop.f32.mrb[6].mxu0  ;;  %v3042_v21 = vld [vmem:[#allocation7 + $0x30] sm:$0xff]   ;;  %v1705_v25 = vrot.slane %v1696_v23, %v298_v0 }
 0x1b6   :  { %2071 = vmatprep.subr.bf16.mxu0 %v2986_v24  ;;  %v1622_v8 = vpop.f32.mrb[7].mxu0  ;;  %2589 = vmatpush3.bf16.msra.mxu1 %v3042_v21  ;;  %v1701_v24 = vrot.slane %v1696_v23, %v294_v62  ;;  %v2559_v62 = vld [vmem:[%s3306_s6] ss:$0 sm:$0xff] }
 0x1b7   :  { %2590 = vmatprep.subr.bf16.mxu1 %v3043_v63 }
 0x1b9   :  { %2072 = vmatpush1.bf16.msra.mxu0 %v2984_v27 }
 0x1ba   :  { %2073 = vmatprep.subr.bf16.mxu0 %v2989_v29  ;;  %2591 = vmatpush3.bf16.msra.mxu1 %v3044_v22 }
 0x1bd   :  { %2074 = vmatpush1.bf16.msra.mxu0 %v2987_v31 }
 0x1be   :  { %2075 = vmatprep.subr.bf16.mxu0 %v2992_v52 }
 0x1c1   :  { %2076 = vmatpush1.bf16.msra.mxu0 %v2990_v34 }
 0x1c2   :  { %2077 = vmatprep.subr.bf16.mxu0 %v2995_v37 }
 0x1c5   :  { %2078 = vmatpush1.bf16.msra.mxu0 %v2993_v38 }
 0x1c6   :  { %2079 = vmatprep.subr.bf16.mxu0 %v2998_v39 }
 0x1c9   :  { %2080 = vmatpush1.bf16.msra.mxu0 %v2996_v40 }
 0x1ca   :  { %2081 = vmatprep.subr.bf16.mxu0 %v3001_v41 }
 0x1cd   :  { %2082 = vmatpush1.bf16.msra.mxu0 %v2999_v42 }
 0x1ce   :  { %2083 = vmatprep.subr.bf16.mxu0 %v3004_v43 }
 0x1d1   :  { %2084 = vmatpush1.bf16.msra.mxu0 %v3002_v44 }
 0x1d2   :  { %2085 = vmatprep.subr.bf16.mxu0 %v3007_v45 }
 0x1d5   :  { %2086 = vmatpush1.bf16.msra.mxu0 %v3005_v46 }
 0x1d6   :  { %2087 = vmatprep.subr.bf16.mxu0 %v3010_v47 }
 0x1d9   :  { %2088 = vmatpush1.bf16.msra.mxu0 %v3008_v48 }
 0x1da   :  { %2089 = vmatprep.subr.bf16.mxu0 %v3013_v49 }
 0x1dd   :  { %2090 = vmatpush1.bf16.msra.mxu0 %v3011_v50 }
 0x1de   :  { %2091 = vmatprep.subr.bf16.mxu0 %v3016_v51 }
 0x1e1   :  { %2092 = vmatpush1.bf16.msra.mxu0 %v3014_v53 }
 0x1e2   :  { %2093 = vmatprep.subr.bf16.mxu0 %v3019_v54 }
 0x1e5   :  { %2094 = vmatpush1.bf16.msra.mxu0 %v3017_v55 }
 0x1e6   :  { %2095 = vmatprep.subr.bf16.mxu0 %v3022_v56 }
 0x1e9   :  { %2096 = vmatpush1.bf16.msra.mxu0 %v3020_v57 }
 0x1ea   :  { %2097 = vmatprep.subr.bf16.mxu0 %v3025_v58 }
 0x1ed   :  { %2098 = vmatpush1.bf16.msra.mxu0 %v3023_v59 }
 0x1ee   :  { %2099 = vmatprep.subr.bf16.mxu0 %v3028_v60 }
 0x1f1   :  { %2100 = vmatpush1.bf16.msra.mxu0 %v3026_v16 }
 0x21e   :  { %v1576_v5 = vpop.f32.mrb[4].mxu1 }
 0x21f   :  { %v2602_v6 = vadd.f32 %v1576_v5, %v303_v3  ;;  %v1578_v7 = vpop.f32.mrb[5].mxu1 }
 0x220   :  { %v2604_v9 = vadd.f32 %v1578_v7, %v307_v4  ;;  %v1580_v10 = vpop.f32.mrb[6].mxu1 }
 0x221   :  { %v2603_v12 = vadd.f32 %v2602_v6, %v3277_v26  ;;  %v1581_v13 = vpop.f32.mrb[7].mxu1 }
 0x222   :  { %v2605_v14 = vadd.f32 %v2604_v9, %v3279_v11 }
 0x223   :  { %v1626_v15 = vmax.f32 %v2603_v12, 0.0 }
 0x224   :  { %v1627_v17 = vmax.f32 %v2605_v14, 0.0 }
 0x225   :  { %v1630_v19 = vpack.c.bf16 %v1626_v15, %v1626_v15 }
 0x226   :  { %v1631_v18 = vpack.c.bf16 %v1627_v17, %v1627_v17 }
 0x228   :  { %2101 = vmatprep.mubr.bf16.mxu0 %v1631_v18 }
 0x229   :  { %2102 = vmatmul.mubr.bf16.vlgmr.msra.gmra.mrb[8].mxu0 %v1630_v19 }
 0x2fc   :  { %v2103_v26 = vpop.f32.mrb[8].mxu0 }
 0x2fd   :  { %v2606_v11 = vadd.f32 %v2103_v26, %v1701_v24  ;;  %v2105_v27 = vpop.f32.mrb[9].mxu0 }
 0x2fe   :  { %v2607_v35 = vadd.f32 %v2105_v27, %v1705_v25  ;;  %v2107_v28 = vpop.f32.mrb[10].mxu0 }
 0x2ff   :  { %v2110_v29 = vmax.f32 %v2606_v11, 0.0  ;;  %v2108_v8 = vpop.f32.mrb[11].mxu0 }
 0x300   :  { %v2111_v30 = vmax.f32 %v2607_v35, 0.0 }
 0x301   :  { %v2112_v32 = vpack.c.bf16 %v2110_v29, %v2110_v29 }
 0x302   :  { %v2113_v31 = vpack.c.bf16 %v2111_v30, %v2111_v30 }
 0x304   :  { %2281 = vmatprep.mubr.bf16.mxu1 %v2113_v31 }
 0x305   :  { %2282 = vmatmul.mubr.bf16.vlgmr.msra.gmra.mrb[8].mxu1 %v2112_v32 }
 0x3d8   :  { %v2592_v52 = vpop.f32.mrb[8].mxu1 }
 0x3d9   :  { %v2593_v33 = vpop.f32.mrb[9].mxu1 }
 0x3da   :  { %v2594_v61 = vadd.f32 %v2593_v33, %v2592_v52  ;;  %v2595_v0 = vpop.f32.mrb[10].mxu1 }
 0x3db   :  { %v2596_v34 = vpop.f32.mrb[11].mxu1 }
 0x3dc   :  { %v2284_v36 = vadd.f32 %v2594_v61, %v2559_v62 }
 0x3de   :  { %2289 = vst [vmem:[%s3307_s7] sm:$0xff] %v2284_v36 }
 0x3df   :  { %2294 = vsyncpa [#allocation3], 1 }
 0x3e0   :  { %2295 = vsyncpa [#allocation5], 1 }
 0x3e1   :  { %2296 = vsyncpa [#allocation8], 1 }

</bundles_post_ra>
